<compile_context>
chip_gen: v6e
topology: v6e:2x2x1
jax: 0.10.0
libtpu: 0.0.40
codegen_flags: <defaults>
</compile_context>

<pallas_src>
import functools

import jax
import jax.numpy as jnp
from jax.experimental import pallas as pl
from jax.experimental.pallas import tpu as pltpu


# -----------------------------------------------------------------------------
# Kernel 1: 1x1 conv + folded BN + ReLU, pixels on lanes, multi-input (concat-free)
# -----------------------------------------------------------------------------
def _make_pw_kernel(n_in):
    def kernel(*refs):
        x_refs = refs[:n_in]                       # each (C_i, T_HW), f32
        w_refs = refs[n_in:2 * n_in]               # each (Cout, C_i), bf16
        b_ref = refs[2 * n_in]                     # (Cout, 1), f32
        o_ref = refs[2 * n_in + 1]                 # (Cout, T_HW)

        acc = jnp.dot(w_refs[0][...], x_refs[0][...].astype(jnp.bfloat16),
                      preferred_element_type=jnp.float32)
        for w_r, x_r in zip(w_refs[1:], x_refs[1:]):
            acc = acc + jnp.dot(w_r[...], x_r[...].astype(jnp.bfloat16),
                                preferred_element_type=jnp.float32)
        y = acc + b_ref[...]
        o_ref[...] = jnp.maximum(y, 0.0).astype(o_ref.dtype)
    return kernel


def conv1x1_bn_relu(xs, p, stride=1, thw_max=4096, vmem_budget=20 * 1024 * 1024):
    """Fused 1x1 conv + eval-mode BN + ReLU.

    xs: list of NCHW tensors (logically concatenated along channels).
    p : {'w': (Cout, sum_ci), 'scale': (Cout,), 'bias': (Cout,)}.
    """
    if stride > 1:
        xs = [x[:, :, ::stride, ::stride] for x in xs]

    n, _, h, w = xs[0].shape
    hw = h * w
    cout = p['w'].shape[0]
    sizes = [x.shape[1] for x in xs]

    # Fold BN scale into the weights; single-pass bf16 MXU operands.
    w_folded = p['w'].astype(jnp.float32) * p['scale'].astype(jnp.float32)[:, None]
    w_bf16 = w_folded.astype(jnp.bfloat16)
    w_parts, off = [], 0
    for c in sizes:
        w_parts.append(w_bf16[:, off:off + c])
        off += c
    bias = p['bias'].reshape(cout, 1).astype(jnp.float32)

    # Free reshape (NCHW is contiguous): pixels land on the lane axis.
    x_flat = [x.reshape(n, c, hw) for x, c in zip(xs, sizes)]

    # Lane tile: as large as the double-buffered VMEM budget allows (v7x-safe).
    bytes_per_col = 8 * (sum(sizes) + cout)        # f32 in/out columns, x2 buffers
    thw = max(128, min(int(thw_max), vmem_budget // bytes_per_col) // 128 * 128)
    if hw <= thw:
        thw = hw                                   # full extent, no HW tiling

    grid = (n, pl.cdiv(hw, thw))
    in_specs = (
        [pl.BlockSpec((None, c, thw), lambda b, j: (b, 0, j)) for c in sizes]
        + [pl.BlockSpec((cout, c), lambda b, j: (0, 0)) for c in sizes]
        + [pl.BlockSpec((cout, 1), lambda b, j: (0, 0))]
    )

    out = pl.pallas_call(
        _make_pw_kernel(len(xs)),
        out_shape=jax.ShapeDtypeStruct((n, cout, hw), xs[0].dtype),
        grid_spec=pltpu.PrefetchScalarGridSpec(
            num_scalar_prefetch=0,
            grid=grid,
            in_specs=in_specs,
            out_specs=pl.BlockSpec((None, cout, thw), lambda b, j: (b, 0, j)),
        ),
        compiler_params=pltpu.CompilerParams(
            dimension_semantics=("parallel", "parallel"),
            vmem_limit_bytes=32 * 1024 * 1024),
    )(*x_flat, *w_parts, bias)

    return out.reshape(n, cout, h, w)


# -----------------------------------------------------------------------------
# Kernel 2: fused Sigmoid + GlobalAvgPool2d (tiled reduction with accumulator)
# -----------------------------------------------------------------------------
def _sig_gap_kernel(x_ref, o_ref, acc_ref, *, hw_total, th, ragged):
    k = pl.program_id(1)
    last = pl.num_programs(1) - 1

    @pl.when(k == 0)
    def _init():
        acc_ref[...] = jnp.zeros_like(acc_ref)

    x = x_ref[...].astype(jnp.float32)
    s = 0.5 * jnp.tanh(0.5 * x) + 0.5              # sigmoid with a single EUP op

    if ragged:
        # Only the last HW tile over-reads past the array edge; mask only there.
        @pl.when(k == last)
        def _masked():
            col = jax.lax.broadcasted_iota(jnp.int32, s.shape, 1)
            sm = jnp.where(col < (hw_total - k * th), s, 0.0)
            acc_ref[...] += jnp.sum(sm, axis=-1, keepdims=True)

        @pl.when(k != last)
        def _full():
            acc_ref[...] += jnp.sum(s, axis=-1, keepdims=True)
    else:
        acc_ref[...] += jnp.sum(s, axis=-1, keepdims=True)

    @pl.when(k == last)
    def _finalize():
        o_ref[...] = (acc_ref[...] * (1.0 / hw_total)).astype(o_ref.dtype)


def sigmoid_gap(x, tr_max=512, th_max=4096):
    """sigmoid(x) then global average pool over H,W: (N, C, H, W) -> (N, C)."""
    n, c, h, w = x.shape
    hw = h * w
    r = n * c
    xf = x.reshape(r, hw)                          # free reshape

    tr = r if r <= tr_max else (tr_max // 8) * 8   # full rows or sublane-aligned tile
    th = hw if hw <= th_max else max(128, (th_max // 128) * 128)
    num_k = pl.cdiv(hw, th)
    ragged = (hw % th) != 0

    out = pl.pallas_call(
        functools.partial(_sig_gap_kernel, hw_total=hw, th=th, ragged=ragged),
        out_shape=jax.ShapeDtypeStruct((r, 1), x.dtype),
        grid_spec=pltpu.PrefetchScalarGridSpec(
            num_scalar_prefetch=0,
            grid=(pl.cdiv(r, tr), num_k),          # reduction axis LAST
            in_specs=[pl.BlockSpec((tr, th), lambda i, k: (i, k))],
            out_specs=pl.BlockSpec((tr, 1), lambda i, k: (i, 0)),
            scratch_shapes=[pltpu.VMEM((tr, 1), jnp.float32)],
        ),
        compiler_params=pltpu.CompilerParams(
            dimension_semantics=("parallel", "arbitrary"),
            vmem_limit_bytes=32 * 1024 * 1024),
    )(xf)

    return out[:, 0].reshape(n, c)


# -----------------------------------------------------------------------------
# Plain-JAX pieces (3x3 conv, bilinear align_corners upsample) + references
# -----------------------------------------------------------------------------
def conv3x3(x, p):
    y = jax.lax.conv_general_dilated(
        x, p['w'], window_strides=(1, 1), padding=((1, 1), (1, 1)),
        dimension_numbers=('NCHW', 'OIHW', 'NCHW'))
    return y + p['b'].reshape(1, -1, 1, 1)


def _interp_matrix(n_out, n_in):
    if n_out == 1 or n_in == 1:
        src = jnp.zeros((n_out,), jnp.float32)
    else:
        src = jnp.arange(n_out, dtype=jnp.float32) * (n_in - 1) / (n_out - 1)
    lo = jnp.clip(jnp.floor(src).astype(jnp.int32), 0, n_in - 1)
    hi = jnp.clip(lo + 1, 0, n_in - 1)
    frac = src - lo.astype(jnp.float32)
    return (jax.nn.one_hot(lo, n_in) * (1.0 - frac)[:, None]
            + jax.nn.one_hot(hi, n_in) * frac[:, None]).astype(jnp.float32)


def bilinear_align_corners(x, out_hw):
    oh, ow = out_hw
    _, _, h, w = x.shape
    ah = _interp_matrix(oh, h)
    aw = _interp_matrix(ow, w)
    y = jnp.einsum('oh,nchw->ncow', ah, x)
    y = jnp.einsum('pw,ncow->ncop', aw, y)
    return y


def _ref_conv1x1_bn_relu(xs, p, stride=1):
    if stride > 1:
        xs = [x[:, :, ::stride, ::stride] for x in xs]
    x = xs[0] if len(xs) == 1 else jnp.concatenate(xs, axis=1)
    w_folded = p['w'].astype(jnp.float32) * p['scale'].astype(jnp.float32)[:, None]
    # Match the kernel's MXU numerics (bf16 operands, f32 accumulation).
    y = jnp.einsum('oi,nihw->nohw', w_folded.astype(jnp.bfloat16),
                   x.astype(jnp.bfloat16), preferred_element_type=jnp.float32)
    y = y + p['bias'].reshape(1, -1, 1, 1)
    return jnp.maximum(y, 0.0)


def _ref_sigmoid_gap(x):
    n, c = x.shape[:2]
    return jnp.mean(jax.nn.sigmoid(x).reshape(n, c, -1), axis=2)


# -----------------------------------------------------------------------------
# MSF_Module forward
# -----------------------------------------------------------------------------
def msf_forward(params, l3, l4, l5, use_pallas=True):
    pw = conv1x1_bn_relu if use_pallas else _ref_conv1x1_bn_relu
    gap = sigmoid_gap if use_pallas else _ref_sigmoid_gap

    f3 = pw([l3], params['input1'], stride=2)
    f4 = pw([l4], params['input2'])
    f5 = pw([l5], params['input3'])
    f5 = bilinear_align_corners(f5, f4.shape[2:])

    # fusion1: concat-free two-input pointwise conv, then 3x3 conv, sigmoid+GAP.
    t = pw([f4, f5], params['fusion1_cbr'])
    t = conv3x3(t, params['fusion1_conv'])
    w1 = gap(t)[:, :, None, None]
    m1 = (1.0 - w1) * f4 + w1 * f5

    t = pw([m1, f3], params['fusion2_cbr'])
    t = conv3x3(t, params['fusion2_conv'])
    w2 = gap(t)[:, :, None, None]
    m2 = (1.0 - w2) * f3 + w2 * m1
    return m2


def make_params(key, in_ch, mid_ch1, cat_ch, mid_ch2, out_ch):
    keys = jax.random.split(key, 8)
    eps = 1e-5

    def cbr(k, ci, co):
        w = jax.random.normal(k, (co, ci), jnp.float32) * (2.0 / ci) ** 0.5
        # PyTorch-initialized eval-mode BN folded: gamma=1, beta=0, mean=0, var=1
        scale = jnp.ones((co,), jnp.float32) / jnp.sqrt(1.0 + eps)
        bias = jnp.zeros((co,), jnp.float32)
        return dict(w=w, scale=scale, bias=bias)

    def c3(k, ci, co):
        w = jax.random.normal(k, (co, ci, 3, 3), jnp.float32) * (2.0 / (ci * 9)) ** 0.5
        b = jnp.zeros((co,), jnp.float32)
        return dict(w=w, b=b)

    return dict(
        input1=cbr(keys[0], in_ch[0], mid_ch1),
        input2=cbr(keys[1], in_ch[1], mid_ch1),
        input3=cbr(keys[2], in_ch[2], mid_ch1),
        fusion1_cbr=cbr(keys[3], cat_ch, mid_ch2),
        fusion1_conv=c3(keys[4], mid_ch2, mid_ch2),
        fusion2_cbr=cbr(keys[5], cat_ch, mid_ch2),
        fusion2_conv=c3(keys[6], mid_ch2, out_ch),
    )


if __name__ == "__main__":
    key = jax.random.PRNGKey(0)
    k_par, k3, k4, k5, k_gap, k_pw = jax.random.split(key, 6)

    # Small shapes consistent with MSF_Module (expand_as requires
    # mid_ch1 == mid_ch2 == out_ch; cat_ch == 2 * mid_ch1; l3 spatial = 2 * l4).
    in_ch = (8, 8, 8)
    mid_ch1 = mid_ch2 = out_ch = 4
    cat_ch = 2 * mid_ch1

    params = make_params(k_par, in_ch, mid_ch1, cat_ch, mid_ch2, out_ch)
    l3 = jax.random.normal(k3, (2, in_ch[0], 16, 16), jnp.float32)
    l4 = jax.random.normal(k4, (2, in_ch[1], 8, 8), jnp.float32)
    l5 = jax.random.normal(k5, (2, in_ch[2], 4, 4), jnp.float32)

    fwd = jax.jit(functools.partial(msf_forward, use_pallas=True))
    out = jax.block_until_ready(fwd(params, l3, l4, l5))

    ref = msf_forward(params, l3, l4, l5, use_pallas=False)
    assert out.shape == (2, out_ch, 8, 8)
    assert jnp.allclose(out, ref, atol=1e-3, rtol=1e-3), float(jnp.max(jnp.abs(out - ref)))

    # Standalone check of the tiled sigmoid+GAP kernel: multiple HW tiles with a
    # masked ragged last tile (400 % 256 != 0) and a non-multiple-of-8 row count.
    xg = jax.random.normal(k_gap, (2, 5, 16, 25), jnp.float32)
    got = jax.block_until_ready(sigmoid_gap(xg, th_max=256))
    refg = _ref_sigmoid_gap(xg)
    assert got.shape == (2, 5)
    assert jnp.allclose(got, refg, atol=1e-4, rtol=1e-4), float(jnp.max(jnp.abs(got - refg)))

    # Standalone check of the pointwise kernel: HW tiling with a clipped (ragged)
    # last lane tile (400 = 3*128 + 16) and the two-input (concat-free) path.
    xa = jax.random.normal(k_pw, (2, 8, 16, 25), jnp.float32)
    xb = xa * 0.5 + 0.25
    pw_p = dict(
        w=jax.random.normal(jax.random.PRNGKey(7), (4, 16), jnp.float32) * 0.3,
        scale=jnp.full((4,), 0.9, jnp.float32),
        bias=jnp.linspace(-0.2, 0.2, 4).astype(jnp.float32))
    got2 = jax.block_until_ready(conv1x1_bn_relu([xa, xb], pw_p, thw_max=128))
    ref2 = _ref_conv1x1_bn_relu([xa, xb], pw_p)
    assert got2.shape == (2, 4, 16, 25)
    assert jnp.allclose(got2, ref2, atol=1e-3, rtol=1e-3), float(jnp.max(jnp.abs(got2 - ref2)))

    print("KERNEL_OK")
</pallas_src>

<mosaic_0001>
module attributes {stable_mosaic.version = 11 : i64} {
  func.func @kernel(%arg0: i32, %arg1: i32, %arg2: memref<1x8x16xf32, #tpu.memory_space<vmem>>, %arg3: memref<4x8xbf16, #tpu.memory_space<vmem>>, %arg4: memref<4x1xf32, #tpu.memory_space<vmem>>, %arg5: memref<1x4x16xf32, #tpu.memory_space<vmem>>) attributes {dimension_semantics = [#tpu.dimension_semantics<parallel>, #tpu.dimension_semantics<parallel>], iteration_bounds = array<i64: 2, 1>, scalar_prefetch = 0 : i64, scratch_operands = 0 : i64, tpu.core_type = #tpu.core_type<tc>, window_params = [{transform_indices = @transform_0, window_bounds = array<i64: 1, 8, 16>}, {pipeline_mode = #tpu.pipeline_mode<synchronous>, transform_indices = @transform_1, window_bounds = array<i64: 4, 8>}, {pipeline_mode = #tpu.pipeline_mode<synchronous>, transform_indices = @transform_2, window_bounds = array<i64: 4, 1>}, {transform_indices = @transform_3, window_bounds = array<i64: 1, 4, 16>}]} {
    %c0 = arith.constant 0 : index
    %c0_0 = arith.constant 0 : index
    %0 = vector.load %arg3[%c0, %c0_0] : memref<4x8xbf16, #tpu.memory_space<vmem>>, vector<4x8xbf16>
    %c0_1 = arith.constant 0 : index
    %c0_2 = arith.constant 0 : index
    %c0_3 = arith.constant 0 : index
    %1 = vector.load %arg2[%c0_1, %c0_2, %c0_3] : memref<1x8x16xf32, #tpu.memory_space<vmem>>, vector<1x8x16xf32>
    %2 = vector.shape_cast %1 : vector<1x8x16xf32> to vector<8x16xf32>
    %3 = arith.truncf %2 : vector<8x16xf32> to vector<8x16xbf16>
    %cst = arith.constant dense<0.000000e+00> : vector<4x16xf32>
    %4 = tpu.matmul %0, %3, %cst {dimension_numbers = #tpu.dot_dimension_numbers<[1], [0], [0], [1], [0, 0, 1, 1], [], []>} : vector<4x8xbf16>, vector<8x16xbf16>, vector<4x16xf32> -> vector<4x16xf32>
    %c0_4 = arith.constant 0 : index
    %c0_5 = arith.constant 0 : index
    %5 = vector.load %arg4[%c0_4, %c0_5] : memref<4x1xf32, #tpu.memory_space<vmem>>, vector<4x1xf32>
    %6 = vector.broadcast %5 : vector<4x1xf32> to vector<4x16xf32>
    %7 = arith.addf %4, %6 : vector<4x16xf32>
    %cst_6 = arith.constant 0.000000e+00 : f32
    %8 = vector.broadcast %cst_6 : f32 to vector<4x16xf32>
    %9 = arith.maximumf %7, %8 : vector<4x16xf32>
    %c0_7 = arith.constant 0 : index
    %c0_8 = arith.constant 0 : index
    %c0_9 = arith.constant 0 : index
    %10 = vector.load %arg5[%c0_7, %c0_8, %c0_9] : memref<1x4x16xf32, #tpu.memory_space<vmem>>, vector<1x4x16xf32>
    %11 = vector.shape_cast %10 : vector<1x4x16xf32> to vector<4x16xf32>
    %12 = vector.shape_cast %9 : vector<4x16xf32> to vector<1x4x16xf32>
    tpu.vector_store %arg5[%c0_7, %c0_8, %c0_9], %12 {strides = array<i32>} : memref<1x4x16xf32, #tpu.memory_space<vmem>>, vector<1x4x16xf32>,
    return
  }
  func.func @transform_0(%arg0: i32, %arg1: i32) -> (i32, i32, i32) {
    %c0_i32 = arith.constant 0 : i32
    %c0_i32_0 = arith.constant 0 : i32
    return %arg0, %c0_i32, %arg1 : i32, i32, i32
  }
  func.func @transform_1(%arg0: i32, %arg1: i32) -> (i32, i32) {
    %c0_i32 = arith.constant 0 : i32
    %c0_i32_0 = arith.constant 0 : i32
    %c0_i32_1 = arith.constant 0 : i32
    return %c0_i32, %c0_i32_0 : i32, i32
  }
  func.func @transform_2(%arg0: i32, %arg1: i32) -> (i32, i32) {
    %c0_i32 = arith.constant 0 : i32
    %c0_i32_0 = arith.constant 0 : i32
    %c0_i32_1 = arith.constant 0 : i32
    return %c0_i32, %c0_i32_0 : i32, i32
  }
  func.func @transform_3(%arg0: i32, %arg1: i32) -> (i32, i32, i32) {
    %c0_i32 = arith.constant 0 : i32
    %c0_i32_0 = arith.constant 0 : i32
    return %arg0, %c0_i32, %arg1 : i32, i32, i32
  }
}

module attributes {stable_mosaic.version = 11 : i64} {
  func.func @kernel(%arg0: i32, %arg1: i32, %arg2: memref<1x4x64xf32, #tpu.memory_space<vmem>>, %arg3: memref<1x4x64xf32, #tpu.memory_space<vmem>>, %arg4: memref<4x4xbf16, #tpu.memory_space<vmem>>, %arg5: memref<4x4xbf16, #tpu.memory_space<vmem>>, %arg6: memref<4x1xf32, #tpu.memory_space<vmem>>, %arg7: memref<1x4x64xf32, #tpu.memory_space<vmem>>) attributes {dimension_semantics = [#tpu.dimension_semantics<parallel>, #tpu.dimension_semantics<parallel>], iteration_bounds = array<i64: 2, 1>, scalar_prefetch = 0 : i64, scratch_operands = 0 : i64, tpu.core_type = #tpu.core_type<tc>, window_params = [{transform_indices = @transform_0, window_bounds = array<i64: 1, 4, 64>}, {transform_indices = @transform_1, window_bounds = array<i64: 1, 4, 64>}, {pipeline_mode = #tpu.pipeline_mode<synchronous>, transform_indices = @transform_2, window_bounds = array<i64: 4, 4>}, {pipeline_mode = #tpu.pipeline_mode<synchronous>, transform_indices = @transform_3, window_bounds = array<i64: 4, 4>}, {pipeline_mode = #tpu.pipeline_mode<synchronous>, transform_indices = @transform_4, window_bounds = array<i64: 4, 1>}, {transform_indices = @transform_5, window_bounds = array<i64: 1, 4, 64>}]} {
    %c0 = arith.constant 0 : index
    %c0_0 = arith.constant 0 : index
    %0 = vector.load %arg4[%c0, %c0_0] : memref<4x4xbf16, #tpu.memory_space<vmem>>, vector<4x4xbf16>
    %c0_1 = arith.constant 0 : index
    %c0_2 = arith.constant 0 : index
    %c0_3 = arith.constant 0 : index
    %1 = vector.load %arg2[%c0_1, %c0_2, %c0_3] : memref<1x4x64xf32, #tpu.memory_space<vmem>>, vector<1x4x64xf32>
    %2 = vector.shape_cast %1 : vector<1x4x64xf32> to vector<4x64xf32>
    %3 = arith.truncf %2 : vector<4x64xf32> to vector<4x64xbf16>
    %cst = arith.constant dense<0.000000e+00> : vector<4x64xf32>
    %4 = tpu.matmul %0, %3, %cst {dimension_numbers = #tpu.dot_dimension_numbers<[1], [0], [0], [1], [0, 0, 1, 1], [], []>} : vector<4x4xbf16>, vector<4x64xbf16>, vector<4x64xf32> -> vector<4x64xf32>
    %c0_4 = arith.constant 0 : index
    %c0_5 = arith.constant 0 : index
    %5 = vector.load %arg5[%c0_4, %c0_5] : memref<4x4xbf16, #tpu.memory_space<vmem>>, vector<4x4xbf16>
    %c0_6 = arith.constant 0 : index
    %c0_7 = arith.constant 0 : index
    %c0_8 = arith.constant 0 : index
    %6 = vector.load %arg3[%c0_6, %c0_7, %c0_8] : memref<1x4x64xf32, #tpu.memory_space<vmem>>, vector<1x4x64xf32>
    %7 = vector.shape_cast %6 : vector<1x4x64xf32> to vector<4x64xf32>
    %8 = arith.truncf %7 : vector<4x64xf32> to vector<4x64xbf16>
    %cst_9 = arith.constant dense<0.000000e+00> : vector<4x64xf32>
    %9 = tpu.matmul %5, %8, %cst_9 {dimension_numbers = #tpu.dot_dimension_numbers<[1], [0], [0], [1], [0, 0, 1, 1], [], []>} : vector<4x4xbf16>, vector<4x64xbf16>, vector<4x64xf32> -> vector<4x64xf32>
    %10 = arith.addf %4, %9 : vector<4x64xf32>
    %c0_10 = arith.constant 0 : index
    %c0_11 = arith.constant 0 : index
    %11 = vector.load %arg6[%c0_10, %c0_11] : memref<4x1xf32, #tpu.memory_space<vmem>>, vector<4x1xf32>
    %12 = vector.broadcast %11 : vector<4x1xf32> to vector<4x64xf32>
    %13 = arith.addf %10, %12 : vector<4x64xf32>
    %cst_12 = arith.constant 0.000000e+00 : f32
    %14 = vector.broadcast %cst_12 : f32 to vector<4x64xf32>
    %15 = arith.maximumf %13, %14 : vector<4x64xf32>
    %c0_13 = arith.constant 0 : index
    %c0_14 = arith.constant 0 : index
    %c0_15 = arith.constant 0 : index
    %16 = vector.load %arg7[%c0_13, %c0_14, %c0_15] : memref<1x4x64xf32, #tpu.memory_space<vmem>>, vector<1x4x64xf32>
    %17 = vector.shape_cast %16 : vector<1x4x64xf32> to vector<4x64xf32>
    %18 = vector.shape_cast %15 : vector<4x64xf32> to vector<1x4x64xf32>
    tpu.vector_store %arg7[%c0_13, %c0_14, %c0_15], %18 {strides = array<i32>} : memref<1x4x64xf32, #tpu.memory_space<vmem>>, vector<1x4x64xf32>,
    return
  }
  func.func @transform_0(%arg0: i32, %arg1: i32) -> (i32, i32, i32) {
    %c0_i32 = arith.constant 0 : i32
    %c0_i32_0 = arith.constant 0 : i32
    return %arg0, %c0_i32, %arg1 : i32, i32, i32
  }
  func.func @transform_1(%arg0: i32, %arg1: i32) -> (i32, i32, i32) {
    %c0_i32 = arith.constant 0 : i32
    %c0_i32_0 = arith.constant 0 : i32
    return %arg0, %c0_i32, %arg1 : i32, i32, i32
  }
  func.func @transform_2(%arg0: i32, %arg1: i32) -> (i32, i32) {
    %c0_i32 = arith.constant 0 : i32
    %c0_i32_0 = arith.constant 0 : i32
    %c0_i32_1 = arith.constant 0 : i32
    return %c0_i32, %c0_i32_0 : i32, i32
  }
  func.func @transform_3(%arg0: i32, %arg1: i32) -> (i32, i32) {
    %c0_i32 = arith.constant 0 : i32
    %c0_i32_0 = arith.constant 0 : i32
    %c0_i32_1 = arith.constant 0 : i32
    return %c0_i32, %c0_i32_0 : i32, i32
  }
  func.func @transform_4(%arg0: i32, %arg1: i32) -> (i32, i32) {
    %c0_i32 = arith.constant 0 : i32
    %c0_i32_0 = arith.constant 0 : i32
    %c0_i32_1 = arith.constant 0 : i32
    return %c0_i32, %c0_i32_0 : i32, i32
  }
  func.func @transform_5(%arg0: i32, %arg1: i32) -> (i32, i32, i32) {
    %c0_i32 = arith.constant 0 : i32
    %c0_i32_0 = arith.constant 0 : i32
    return %arg0, %c0_i32, %arg1 : i32, i32, i32
  }
}

module attributes {stable_mosaic.version = 11 : i64} {
  func.func @kernel(%arg0: i32, %arg1: i32, %arg2: memref<1x8x64xf32, #tpu.memory_space<vmem>>, %arg3: memref<4x8xbf16, #tpu.memory_space<vmem>>, %arg4: memref<4x1xf32, #tpu.memory_space<vmem>>, %arg5: memref<1x4x64xf32, #tpu.memory_space<vmem>>) attributes {dimension_semantics = [#tpu.dimension_semantics<parallel>, #tpu.dimension_semantics<parallel>], iteration_bounds = array<i64: 2, 1>, scalar_prefetch = 0 : i64, scratch_operands = 0 : i64, tpu.core_type = #tpu.core_type<tc>, window_params = [{transform_indices = @transform_0, window_bounds = array<i64: 1, 8, 64>}, {pipeline_mode = #tpu.pipeline_mode<synchronous>, transform_indices = @transform_1, window_bounds = array<i64: 4, 8>}, {pipeline_mode = #tpu.pipeline_mode<synchronous>, transform_indices = @transform_2, window_bounds = array<i64: 4, 1>}, {transform_indices = @transform_3, window_bounds = array<i64: 1, 4, 64>}]} {
    %c0 = arith.constant 0 : index
    %c0_0 = arith.constant 0 : index
    %0 = vector.load %arg3[%c0, %c0_0] : memref<4x8xbf16, #tpu.memory_space<vmem>>, vector<4x8xbf16>
    %c0_1 = arith.constant 0 : index
    %c0_2 = arith.constant 0 : index
    %c0_3 = arith.constant 0 : index
    %1 = vector.load %arg2[%c0_1, %c0_2, %c0_3] : memref<1x8x64xf32, #tpu.memory_space<vmem>>, vector<1x8x64xf32>
    %2 = vector.shape_cast %1 : vector<1x8x64xf32> to vector<8x64xf32>
    %3 = arith.truncf %2 : vector<8x64xf32> to vector<8x64xbf16>
    %cst = arith.constant dense<0.000000e+00> : vector<4x64xf32>
    %4 = tpu.matmul %0, %3, %cst {dimension_numbers = #tpu.dot_dimension_numbers<[1], [0], [0], [1], [0, 0, 1, 1], [], []>} : vector<4x8xbf16>, vector<8x64xbf16>, vector<4x64xf32> -> vector<4x64xf32>
    %c0_4 = arith.constant 0 : index
    %c0_5 = arith.constant 0 : index
    %5 = vector.load %arg4[%c0_4, %c0_5] : memref<4x1xf32, #tpu.memory_space<vmem>>, vector<4x1xf32>
    %6 = vector.broadcast %5 : vector<4x1xf32> to vector<4x64xf32>
    %7 = arith.addf %4, %6 : vector<4x64xf32>
    %cst_6 = arith.constant 0.000000e+00 : f32
    %8 = vector.broadcast %cst_6 : f32 to vector<4x64xf32>
    %9 = arith.maximumf %7, %8 : vector<4x64xf32>
    %c0_7 = arith.constant 0 : index
    %c0_8 = arith.constant 0 : index
    %c0_9 = arith.constant 0 : index
    %10 = vector.load %arg5[%c0_7, %c0_8, %c0_9] : memref<1x4x64xf32, #tpu.memory_space<vmem>>, vector<1x4x64xf32>
    %11 = vector.shape_cast %10 : vector<1x4x64xf32> to vector<4x64xf32>
    %12 = vector.shape_cast %9 : vector<4x64xf32> to vector<1x4x64xf32>
    tpu.vector_store %arg5[%c0_7, %c0_8, %c0_9], %12 {strides = array<i32>} : memref<1x4x64xf32, #tpu.memory_space<vmem>>, vector<1x4x64xf32>,
    return
  }
  func.func @transform_0(%arg0: i32, %arg1: i32) -> (i32, i32, i32) {
    %c0_i32 = arith.constant 0 : i32
    %c0_i32_0 = arith.constant 0 : i32
    return %arg0, %c0_i32, %arg1 : i32, i32, i32
  }
  func.func @transform_1(%arg0: i32, %arg1: i32) -> (i32, i32) {
    %c0_i32 = arith.constant 0 : i32
    %c0_i32_0 = arith.constant 0 : i32
    %c0_i32_1 = arith.constant 0 : i32
    return %c0_i32, %c0_i32_0 : i32, i32
  }
  func.func @transform_2(%arg0: i32, %arg1: i32) -> (i32, i32) {
    %c0_i32 = arith.constant 0 : i32
    %c0_i32_0 = arith.constant 0 : i32
    %c0_i32_1 = arith.constant 0 : i32
    return %c0_i32, %c0_i32_0 : i32, i32
  }
  func.func @transform_3(%arg0: i32, %arg1: i32) -> (i32, i32, i32) {
    %c0_i32 = arith.constant 0 : i32
    %c0_i32_0 = arith.constant 0 : i32
    return %arg0, %c0_i32, %arg1 : i32, i32, i32
  }
}

module attributes {stable_mosaic.version = 11 : i64} {
  func.func @_sig_gap_kernel(%arg0: i32, %arg1: i32, %arg2: memref<8x64xf32, #tpu.memory_space<vmem>>, %arg3: memref<8x1xf32, #tpu.memory_space<vmem>>, %arg4: memref<8x1xf32, #tpu.memory_space<vmem>>) attributes {dimension_semantics = [#tpu.dimension_semantics<parallel>, #tpu.dimension_semantics<arbitrary>], iteration_bounds = array<i64: 1, 1>, scalar_prefetch = 0 : i64, scratch_operands = 1 : i64, tpu.core_type = #tpu.core_type<tc>, window_params = [{transform_indices = @transform_0, window_bounds = array<i64: 8, 64>}, {transform_indices = @transform_1, window_bounds = array<i64: 8, 1>}]} {
    %c0_i32 = arith.constant 0 : i32
    %0 = arith.cmpi eq, %arg1, %c0_i32 : i32
    %1 = arith.extui %0 : i1 to i32
    %c0_i32_0 = arith.constant 0 : i32
    %2 = arith.cmpi ne, %1, %c0_i32_0 : i32
    scf.if %2 {
      %cst_11 = arith.constant 0.000000e+00 : f32
      %19 = vector.broadcast %cst_11 : f32 to vector<8x1xf32>
      %c0_12 = arith.constant 0 : index
      %c0_13 = arith.constant 0 : index
      %20 = vector.load %arg4[%c0_12, %c0_13] : memref<8x1xf32, #tpu.memory_space<vmem>>, vector<8x1xf32>
      tpu.vector_store %arg4[%c0_12, %c0_13], %19 {strides = array<i32>} : memref<8x1xf32, #tpu.memory_space<vmem>>, vector<8x1xf32>,
    } else {
    }
    %c0 = arith.constant 0 : index
    %c0_1 = arith.constant 0 : index
    %3 = vector.load %arg2[%c0, %c0_1] : memref<8x64xf32, #tpu.memory_space<vmem>>, vector<8x64xf32>
    %cst = arith.constant 5.000000e-01 : f32
    %4 = vector.broadcast %cst : f32 to vector<8x64xf32>
    %5 = arith.mulf %4, %3 : vector<8x64xf32>
    %6 = math.tanh %5 : vector<8x64xf32>
    %cst_2 = arith.constant 5.000000e-01 : f32
    %7 = vector.broadcast %cst_2 : f32 to vector<8x64xf32>
    %8 = arith.mulf %7, %6 : vector<8x64xf32>
    %cst_3 = arith.constant 5.000000e-01 : f32
    %9 = vector.broadcast %cst_3 : f32 to vector<8x64xf32>
    %10 = arith.addf %8, %9 : vector<8x64xf32>
    %c0_4 = arith.constant 0 : index
    %c0_5 = arith.constant 0 : index
    %11 = vector.load %arg4[%c0_4, %c0_5] : memref<8x1xf32, #tpu.memory_space<vmem>>, vector<8x1xf32>
    %cst_6 = arith.constant dense<0.000000e+00> : vector<8xf32>
    %12 = vector.multi_reduction <add>, %10, %cst_6 [1] : vector<8x64xf32> to vector<8xf32>
    %13 = vector.shape_cast %12 : vector<8xf32> to vector<8x1xf32>
    %14 = arith.addf %11, %13 : vector<8x1xf32>
    %c0_7 = arith.constant 0 : index
    %c0_8 = arith.constant 0 : index
    %15 = vector.load %arg4[%c0_7, %c0_8] : memref<8x1xf32, #tpu.memory_space<vmem>>, vector<8x1xf32>
    tpu.vector_store %arg4[%c0_7, %c0_8], %14 {strides = array<i32>} : memref<8x1xf32, #tpu.memory_space<vmem>>, vector<8x1xf32>,
    %c0_i32_9 = arith.constant 0 : i32
    %16 = arith.cmpi eq, %arg1, %c0_i32_9 : i32
    %17 = arith.extui %16 : i1 to i32
    %c0_i32_10 = arith.constant 0 : i32
    %18 = arith.cmpi ne, %17, %c0_i32_10 : i32
    scf.if %18 {
      %c0_11 = arith.constant 0 : index
      %c0_12 = arith.constant 0 : index
      %19 = vector.load %arg4[%c0_11, %c0_12] : memref<8x1xf32, #tpu.memory_space<vmem>>, vector<8x1xf32>
      %cst_13 = arith.constant 1.562500e-02 : f32
      %20 = vector.broadcast %cst_13 : f32 to vector<8x1xf32>
      %21 = arith.mulf %19, %20 : vector<8x1xf32>
      %c0_14 = arith.constant 0 : index
      %c0_15 = arith.constant 0 : index
      %22 = vector.load %arg3[%c0_14, %c0_15] : memref<8x1xf32, #tpu.memory_space<vmem>>, vector<8x1xf32>
      tpu.vector_store %arg3[%c0_14, %c0_15], %21 {strides = array<i32>} : memref<8x1xf32, #tpu.memory_space<vmem>>, vector<8x1xf32>,
    } else {
    }
    return
  }
  func.func @transform_0(%arg0: i32, %arg1: i32) -> (i32, i32) {
    %c0_i32 = arith.constant 0 : i32
    return %arg0, %arg1 : i32, i32
  }
  func.func @transform_1(%arg0: i32, %arg1: i32) -> (i32, i32) {
    %c0_i32 = arith.constant 0 : i32
    %c0_i32_0 = arith.constant 0 : i32
    return %arg0, %c0_i32 : i32, i32
  }
}

</mosaic_0001>

<bundles_post_ra>
// kernel: msf_forward.9
= control target key start
LH: loop header
LB: loop body
LE: loop exit
PB: predicated region body
PF: predicated region fallthrough
CT: control target
= control target key end

     0   :  { %s425_s12 = smov 0   ;;  %s427_s13 = smov 0   ;;  %s464_s0 = inlined_call_operand.vmem [shape: f32[2,8,16], index: 0, kind: input, shape index: {}]   ;;  %s465_s1 = inlined_call_operand.vmem [shape: bf16[4,8], index: 1, kind: input, shape index: {}]   ;;  %s466_s2 = inlined_call_operand.vmem [shape: f32[4,1], index: 2, kind: input, shape index: {}]   ;;  %s467_s3 = inlined_call_operand.vmem [shape: f32[2,4,16], index: 3, kind: output, shape index: {}]  }
   0x1   :  { %s429_s14 = smov 0  }
   0x2 LB: > { %s25_s15 = sadd.s32 1, %s396_s13  ;;  %p336_p0 = scmp.ge.s32.totalorder %s400_s14, 1  ;;  %s400_s14 = sphi %s429_s14, %s13_s14   ;;  %s396_s13 = sphi %s427_s13, %s469_s13   ;;  %s392_s12 = sphi %s425_s12, %s468_s12  }
   0x3   : > { %p27_p1 = scmp.ge.s32.totalorder %s25_s15, 2  ;;  %p155_p2 = scmp.lt.s32.totalorder %s400_s14, 3 }
   0x5   : > { %s471_s15 = smov (%p27_p1, %s25_s15), 0  ;;  %p156_p3 = pnand %p336_p0, %p155_p2 }
   0x6   : > { %p183_p4 = scmp.lt.s32.totalorder (!%p156_p3), %s392_s12, 1 }
   0x7   : > { %159 = sbr.rel (%p156_p3) target bundleno = 221 (0xdd), region = 32 }
   0xc   : > { %v402_v0 = vmov 0.0   ;;  %vm403_vm0 = vmmov 0   ;;  %v201_v1 = vld [vmem:[%s466_s2] sm:$0xf]  ;;  %s473_s12 = smov (!%p183_p4, %s392_s12), 1  ;;  %v404_v2 = vmov 0  }
   0xd   : > { %344 = vmatprep.subr.bf16.mxu0 %v402_v0  ;;  %346 = vmatprep.mubr.msk.bf16.mxu0 %vm403_vm0, %v402_v0  ;;  %s337_s18 = sshll.u32 %s473_s12, 3  ;;  %vm211_vm1 = vcmask 1043456   ;;  %v198_v6 = vld [vmem:[%s465_s1] sm:$0x3]  ;;  %vm207_vm2 = vcmask 64512   ;;  %s338_s24 = sshll.u32 %s473_s12, 2 }
   0xe   : > { %377 = vset.pattern.permute.xlu0 %v404_v2  ;;  %s189_s21 = scalar_lea.vmem %s464_s0, %s337_s18  ;;  %s196_s27 = scalar_lea.vmem %s467_s3, %s338_s24  ;;  %vm256_vm3 = vcmask 125952  }
   0xf   : > { %204 = vperm.xlu0 %377, %v201_v1   ;;  %v199_v3 = vld [vmem:[%s189_s21] sm:$0xff] }
  0x10   : > { %v200_v4 = vpack.c.bf16 %v199_v3, %v199_v3 }
  0x12   : > { %v213_v5 = vsel %vm211_vm1, %v200_v4, 0 }
  0x13   : > { %345 = vmatpush3.bf16.msra.mxu0 %v213_v5 }
  0x16   : > { %347 = vmatmul.mubr.msk.bf16.vlgmr.msra.gmra.mxu0 %vm207_vm2, %v198_v6 }
  0x8a   : > { %v205_v7 = vpop.permute.xlu0 %204 }
  0xd6   : > { %v249_v8 = vpop.f32.mrf.mxu0 }
  0xd7   : > { %v250_v9 = vadd.f32 %v249_v8, %v205_v7 }
  0xd8   : > { %v348_v10 = vpop.f32.mrf.mxu0 }
  0xd9   : > { %v255_v11 = vmax.f32 %v250_v9, 0.0 }
  0xda   : > { %v252_v12 = vpop.f32.mrf.mxu0 }
  0xdb   : > { %257 = vst.msk [vmem:[%s196_s27] sm:$0xf] %vm256_vm3, %v255_v11 }
  0xdc   : > { %v349_v13 = vpop.f32.mrf.mxu0 }
  0xdd PF: > { %s13_s14 = sadd.s32 1, %s400_s14   ;;  %s468_s12 = smov %s396_s13 }
  0xde   : > { %p10_p5 = scmp.ge.s32.totalorder %s13_s14, 4   ;;  %s469_s13 = smov %s471_s15 }
  0xe0   :  { %12 = sbr.rel (!%p10_p5) target bundleno = 2 (0x2), region = 62 }

// kernel: msf_forward.8
= control target key start
LH: loop header
LB: loop body
LE: loop exit
PB: predicated region body
PF: predicated region fallthrough
CT: control target
= control target key end

     0   :  { %s425_s12 = smov 0   ;;  %s427_s13 = smov 0   ;;  %s464_s0 = inlined_call_operand.vmem [shape: f32[2,8,64], index: 0, kind: input, shape index: {}]   ;;  %s465_s1 = inlined_call_operand.vmem [shape: bf16[4,8], index: 1, kind: input, shape index: {}]   ;;  %s466_s2 = inlined_call_operand.vmem [shape: f32[4,1], index: 2, kind: input, shape index: {}]   ;;  %s467_s3 = inlined_call_operand.vmem [shape: f32[2,4,64], index: 3, kind: output, shape index: {}]  }
   0x1   :  { %s429_s14 = smov 0  }
   0x2 LB: > { %s25_s15 = sadd.s32 1, %s396_s13  ;;  %p336_p0 = scmp.ge.s32.totalorder %s400_s14, 1  ;;  %s400_s14 = sphi %s429_s14, %s13_s14   ;;  %s396_s13 = sphi %s427_s13, %s469_s13   ;;  %s392_s12 = sphi %s425_s12, %s468_s12  }
   0x3   : > { %p27_p1 = scmp.ge.s32.totalorder %s25_s15, 2  ;;  %p155_p2 = scmp.lt.s32.totalorder %s400_s14, 3 }
   0x5   : > { %s471_s15 = smov (%p27_p1, %s25_s15), 0  ;;  %p156_p3 = pnand %p336_p0, %p155_p2 }
   0x6   : > { %p183_p4 = scmp.lt.s32.totalorder (!%p156_p3), %s392_s12, 1 }
   0x7   : > { %159 = sbr.rel (%p156_p3) target bundleno = 221 (0xdd), region = 32 }
   0xc   : > { %v402_v0 = vmov 0.0   ;;  %vm403_vm0 = vmmov 0   ;;  %v201_v1 = vld [vmem:[%s466_s2] sm:$0xf]  ;;  %s473_s12 = smov (!%p183_p4, %s392_s12), 1  ;;  %v404_v2 = vmov 0  }
   0xd   : > { %344 = vmatprep.subr.bf16.mxu0 %v402_v0  ;;  %346 = vmatprep.mubr.msk.bf16.mxu0 %vm403_vm0, %v402_v0  ;;  %s337_s18 = sshll.u32 %s473_s12, 3  ;;  %vm211_vm1 = vcmask 1043456   ;;  %v198_v6 = vld [vmem:[%s465_s1] sm:$0x3]  ;;  %vm207_vm2 = vcmask 64512   ;;  %s338_s24 = sshll.u32 %s473_s12, 2 }
   0xe   : > { %377 = vset.pattern.permute.xlu0 %v404_v2  ;;  %s189_s21 = scalar_lea.vmem %s464_s0, %s337_s18  ;;  %s196_s27 = scalar_lea.vmem %s467_s3, %s338_s24  ;;  %vm256_vm3 = vcmask 519168  }
   0xf   : > { %204 = vperm.xlu0 %377, %v201_v1   ;;  %v199_v3 = vld [vmem:[%s189_s21] sm:$0xff] }
  0x10   : > { %v200_v4 = vpack.c.bf16 %v199_v3, %v199_v3 }
  0x12   : > { %v213_v5 = vsel %vm211_vm1, %v200_v4, 0 }
  0x13   : > { %345 = vmatpush3.bf16.msra.mxu0 %v213_v5 }
  0x16   : > { %347 = vmatmul.mubr.msk.bf16.vlgmr.msra.gmra.mxu0 %vm207_vm2, %v198_v6 }
  0x8a   : > { %v205_v7 = vpop.permute.xlu0 %204 }
  0xd6   : > { %v249_v8 = vpop.f32.mrf.mxu0 }
  0xd7   : > { %v250_v9 = vadd.f32 %v249_v8, %v205_v7 }
  0xd8   : > { %v348_v10 = vpop.f32.mrf.mxu0 }
  0xd9   : > { %v255_v11 = vmax.f32 %v250_v9, 0.0 }
  0xda   : > { %v252_v12 = vpop.f32.mrf.mxu0 }
  0xdb   : > { %257 = vst.msk [vmem:[%s196_s27] sm:$0xf] %vm256_vm3, %v255_v11 }
  0xdc   : > { %v349_v13 = vpop.f32.mrf.mxu0 }
  0xdd PF: > { %s13_s14 = sadd.s32 1, %s400_s14   ;;  %s468_s12 = smov %s396_s13 }
  0xde   : > { %p10_p5 = scmp.ge.s32.totalorder %s13_s14, 4   ;;  %s469_s13 = smov %s471_s15 }
  0xe0   :  { %12 = sbr.rel (!%p10_p5) target bundleno = 2 (0x2), region = 62 }

// kernel: msf_forward.10
= control target key start
LH: loop header
LB: loop body
LE: loop exit
PB: predicated region body
PF: predicated region fallthrough
CT: control target
= control target key end

     0   :  { %s592_s18 = smov 0   ;;  %s594_s19 = smov 0   ;;  %s642_s0 = inlined_call_operand.vmem [shape: f32[2,4,64], index: 0, kind: input, shape index: {}]   ;;  %s643_s1 = inlined_call_operand.vmem [shape: f32[2,4,64], index: 1, kind: input, shape index: {}]   ;;  %s644_s2 = inlined_call_operand.vmem [shape: bf16[4,4], index: 2, kind: input, shape index: {}]   ;;  %s645_s3 = inlined_call_operand.vmem [shape: bf16[4,4], index: 3, kind: input, shape index: {}]   ;;  %s646_s4 = inlined_call_operand.vmem [shape: f32[4,1], index: 4, kind: input, shape index: {}]   ;;  %s647_s5 = inlined_call_operand.vmem [shape: f32[2,4,64], index: 5, kind: output, shape index: {}]  }
   0x1   :  { %s596_s20 = smov 0  }
   0x2 LB: > { %s27_s21 = sadd.s32 1, %s553_s19  ;;  %p483_p0 = scmp.ge.s32.totalorder %s557_s20, 1  ;;  %s557_s20 = sphi %s596_s20, %s15_s20   ;;  %s553_s19 = sphi %s594_s19, %s649_s19   ;;  %s549_s18 = sphi %s592_s18, %s648_s18  }
   0x3   : > { %p29_p1 = scmp.ge.s32.totalorder %s27_s21, 2  ;;  %p219_p2 = scmp.lt.s32.totalorder %s557_s20, 3 }
   0x5   : > { %s651_s21 = smov (%p29_p1, %s27_s21), 0  ;;  %p220_p3 = pnand %p483_p0, %p219_p2 }
   0x6   : > { %p258_p4 = scmp.lt.s32.totalorder (!%p220_p3), %s549_s18, 1 }
   0x7   : > { %223 = sbr.rel (%p220_p3) target bundleno = 223 (0xdf), region = 40 }
   0xc   : > { %v559_v0 = vmov 0.0   ;;  %v380_v1 = vld [vmem:[%s646_s4] sm:$0xf]  ;;  %s653_s18 = smov (!%p258_p4, %s549_s18), 1  ;;  %vm560_vm0 = vmmov 0   ;;  %v561_v2 = vmov 0  }
   0xd   : > { %495 = vmatprep.subr.bf16.mxu0 %v559_v0  ;;  %501 = vmatprep.subr.bf16.mxu1 %v559_v0  ;;  %s613_s24 = sshll.u32 %s653_s18, 2  ;;  %vm290_vm1 = vcmask 1041408   ;;  %v283_v9 = vld [vmem:[%s645_s3] sm:$0x3]  ;;  %vm286_vm2 = vcmask 31744   ;;  %vm388_vm3 = vcmask 519168  }
   0xe   : > { %497 = vmatprep.mubr.msk.bf16.mxu0 %vm560_vm0, %v559_v0  ;;  %503 = vmatprep.mubr.msk.bf16.mxu1 %vm560_vm0, %v559_v0  ;;  %s271_s27 = scalar_lea.vmem %s643_s1, %s613_s24  ;;  %s264_s30 = scalar_lea.vmem %s642_s0, %s613_s24  ;;  %v280_v10 = vld [vmem:[%s644_s2] sm:$0x3] }
   0xf   : > { %534 = vset.pattern.permute.xlu0 %v561_v2  ;;  %v284_v3 = vld [vmem:[%s271_s27] sm:$0xf]  ;;  %s278_s12 = scalar_lea.vmem %s647_s5, %s613_s24 }
  0x10   : > { %383 = vperm.xlu0 %534, %v380_v1   ;;  %v285_v4 = vpack.c.bf16 %v284_v3, %v284_v3  ;;  %v281_v5 = vld [vmem:[%s264_s30] sm:$0xf] }
  0x11   : > { %v282_v6 = vpack.c.bf16 %v281_v5, %v281_v5 }
  0x12   : > { %v292_v7 = vsel %vm290_vm1, %v285_v4, 0 }
  0x13   : > { %496 = vmatpush3.bf16.msra.mxu0 %v292_v7  ;;  %v338_v8 = vsel %vm290_vm1, %v282_v6, 0 }
  0x14   : > { %502 = vmatpush3.bf16.msra.mxu1 %v338_v8 }
  0x16   : > { %498 = vmatmul.mubr.msk.bf16.vlgmr.msra.gmra.mxu0 %vm286_vm2, %v283_v9 }
  0x17   : > { %504 = vmatmul.mubr.msk.bf16.vlgmr.msra.gmra.mxu1 %vm286_vm2, %v280_v10 }
  0x8b   : > { %v384_v13 = vpop.permute.xlu0 %383 }
  0xd6   : > { %v328_v11 = vpop.f32.mrf.mxu0 }
  0xd7   : > { %v374_v12 = vpop.f32.mrf.mxu1 }
  0xd8   : > { %v375_v14 = vadd.f32 %v374_v12, %v328_v11  ;;  %v499_v15 = vpop.f32.mrf.mxu0 }
  0xd9   : > { %v505_v16 = vpop.f32.mrf.mxu1 }
  0xda   : > { %v386_v17 = vadd.f32 %v384_v13, %v375_v14  ;;  %v331_v18 = vpop.f32.mrf.mxu0 }
  0xdb   : > { %v377_v19 = vpop.f32.mrf.mxu1 }
  0xdc   : > { %v387_v20 = vmax.f32 %v386_v17, 0.0  ;;  %v500_v21 = vpop.f32.mrf.mxu0 }
  0xdd   : > { %v506_v22 = vpop.f32.mrf.mxu1 }
  0xde   : > { %389 = vst.msk [vmem:[%s278_s12] sm:$0xf] %vm388_vm3, %v387_v20 }
  0xdf PF: > { %s15_s20 = sadd.s32 1, %s557_s20   ;;  %s648_s18 = smov %s553_s19 }
  0xe0   : > { %p12_p5 = scmp.ge.s32.totalorder %s15_s20, 4   ;;  %s649_s19 = smov %s651_s21 }
  0xe2   :  { %14 = sbr.rel (!%p12_p5) target bundleno = 2 (0x2), region = 73 }

// kernel: msf_forward.11
= control target key start
LH: loop header
LB: loop body
LE: loop exit
PB: predicated region body
PF: predicated region fallthrough
CT: control target
= control target key end

     0   :  { %vm12_vm0 = vcmask 7168   ;;  %v40_v1 = vmov 0.0   ;;  %vm20_vm1 = vcmask 523264   ;;  %s60_s0 = inlined_call_operand.vmem [shape: f32[8,64], index: 0, kind: input, shape index: {}]   ;;  %s61_s1 = inlined_call_operand.vmem [shape: f32[8,1], index: 1, kind: output, shape index: {}]  }
   0x1   :  { %v14_v0 = vld [vmem:[%s60_s0] sm:$0xff]  ;;  %13 = vst.msk [vmem:[#allocation2] sm:$0xff] %vm12_vm0, %v40_v1 }
   0x2   :  { %v15_v2 = vmul.f32 0.5, %v14_v0 }
   0x4   :  { %38 = vtanh.f32 %v15_v2 }
   0x8   :  { %v19_v7 = vld [vmem:[#allocation2] sm:$0xff] }
  0x11   :  { %v39_v3 = vpop.eup %38 }
  0x12   :  { %v17_v4 = vmul.f32 0.5, %v39_v3 }
  0x14   :  { %v18_v5 = vadd.f32 0.5, %v17_v4 }
  0x16   :  { %v21_v6 = vsel %vm20_vm1, %v18_v5, 0.0 }
  0x17   :  { %22 = vadd.xlane.f32.xlu0 %v21_v6 }
  0xa0   :  { %v23_v8 = vpop.xlane.xlu0 %22 }
  0xa1   :  { %v24_v9 = vadd.f32 %v23_v8, %v19_v7 }
  0xa3   :  { %26 = vst.msk [vmem:[#allocation2] sm:$0xff] %vm12_vm0, %v24_v9 }
  0xaa   :  { %v30_v10 = vld [vmem:[#allocation2] sm:$0xff] }
  0xab   :  { %v31_v11 = vmul.f32 0.015625, %v30_v10 }
  0xad   :  { %32 = vst.msk [vmem:[%s61_s1] sm:$0xff] %vm12_vm0, %v31_v11 }

</bundles_post_ra>
